<compile_context>
chip_gen: v5e
topology: v5e:2x2
jax: 0.10.0
libtpu: 0.0.40
codegen_flags: <defaults>
</compile_context>

<pallas_src>
import functools

import numpy as np
import jax
import jax.numpy as jnp
from jax import lax
from jax.experimental import pallas as pl
from jax.experimental.pallas import tpu as pltpu


def _lincrf_kernel(words_ref, const_ref, vals_ref):
    """Single fused kernel: build the masked one-hot LHS, one MXU matmul, add bias, store."""
    Rp, n_cols = words_ref.shape          # packed vals rows, n_cols = 2*pack word-id columns
    L = const_ref.shape[0] - Rp           # contraction size = 2*pack*V (weight-slab rows)
    V = L // n_cols                       # vocab size (lane-segment width)

    w = words_ref[...]                                          # (Rp, n_cols) int32
    iota = lax.broadcasted_iota(jnp.int32, (Rp, L), 1)          # lane index, 2-D iota

    # Per-lane segment select: lanes [c*V, (c+1)*V) hold word-id column c shifted by c*V.
    # The wrapper's -1 sentinel (first-word slot of rows with t != 0) becomes c*V - 1 and
    # can never match the iota inside its own segment -> contributes an all-zero one-hot.
    sel = w[:, n_cols - 1:n_cols] + (n_cols - 1) * V
    for c in range(n_cols - 2, -1, -1):
        sel = jnp.where(iota < (c + 1) * V, w[:, c:c + 1] + c * V, sel)
    lhs = (sel == iota).astype(jnp.float32)                     # fused one-hot LHS (Rp, L)

    wslab = const_ref[0:L, :]                                   # (L, pack*C*C) weight slab
    bias = const_ref[L:L + Rp, :]                               # (Rp, pack*C*C) additive bias
    vals_ref[...] = (jnp.dot(lhs, wslab, preferred_element_type=jnp.float32)
                     + bias)                                    # single lane-dense store


def prepare_params(w_lin, b_lin, w_trans, w_rec, B, N):
    """One-time host-side prep: fold all static weights into one packed constant slab."""
    w_lin = np.asarray(w_lin, np.float32)        # (C, V)   linear.weight
    b_lin = np.asarray(b_lin, np.float32)        # (C,)     linear.bias
    w_trans = np.asarray(w_trans, np.float32)    # (C, C)   transition.weight
    C, V = w_lin.shape
    CC = C * C
    R = B * (N - 1)

    # lane packing: `pack` consecutive (C*C)-wide vals rows per 128-lane output row
    pack = 128 // CC if (CC <= 128 and 128 % CC == 0) else 1
    while pack > 1 and R % pack != 0:
        pack //= 2
    Rp = R // pack
    lanes = pack * CC
    L = 2 * pack * V

    i_idx = np.arange(CC) // C                   # flat lane q -> i
    j_idx = np.arange(CC) % C                    # flat lane q -> j

    # W2[v, q] = w_lin[i_q, v]  (next-word term, broadcast over j)
    # W2[V+v,q] = w_lin[j_q, v] (t==0 first-word term, broadcast over i)  -- exact re-indexing
    W2 = np.concatenate([w_lin.T[:, i_idx], w_lin.T[:, j_idx]], axis=0)   # (2V, CC)
    Wpk = np.zeros((L, lanes), np.float32)                                # block-diag(W2) x pack
    for p in range(pack):
        Wpk[p * 2 * V:(p + 1) * 2 * V, p * CC:(p + 1) * CC] = W2

    # additive bias slab: T[i, j] + b_lin[i] + [t==0] * b_lin[j]
    bias = np.tile(w_trans.reshape(1, CC) + b_lin[i_idx][None, :], (R, 1))
    bias[np.arange(R) % (N - 1) == 0] += b_lin[j_idx][None, :]

    const = np.concatenate([Wpk, bias.reshape(Rp, lanes)], axis=0)        # (L + Rp, lanes)

    # rec_emission_probs depends only on weights -> hoisted out of the kernel (perf review).
    rec = jax.nn.log_softmax(jnp.asarray(w_rec, jnp.float32).T, axis=0)   # (V, C)

    params = dict(const=jnp.asarray(const), rec=rec)
    cfg = dict(V=V, C=C, pack=pack)              # static ints, kept OUT of the jitted pytree
    return params, cfg


def lincrf_forward(words, params, *, cfg):
    """words: (B, N) int32. Returns (vals (B, N-1, C, C), rec_emission_probs (V, C))."""
    C, pack = cfg["C"], cfg["pack"]
    CC = C * C
    B, N = words.shape
    R = B * (N - 1)
    Rp = R // pack
    lanes = pack * CC
    const = params["const"]
    L = const.shape[0] - Rp

    # Index plumbing (tiny XLA ops on a few dozen ints): per vals-row r=(b, t) pack the pair
    # [words[b, t+1], words[b, 0] if t == 0 else -1], `pack` rows per kernel line.
    wn = words[:, 1:]                                                    # (B, N-1) next word
    wf = jnp.where(jnp.arange(N - 1)[None, :] == 0, words[:, :1], -1)    # (B, N-1) masked first
    words_pk = jnp.stack([wn, wf], axis=-1).astype(jnp.int32).reshape(Rp, 2 * pack)

    vals_pk = pl.pallas_call(
        _lincrf_kernel,
        grid=(1,),
        in_specs=[pl.BlockSpec((Rp, 2 * pack), lambda i: (0, 0)),        # packed word ids
                  pl.BlockSpec((L + Rp, lanes), lambda i: (0, 0))],      # packed const slab
        out_specs=pl.BlockSpec((Rp, lanes), lambda i: (0, 0)),
        out_shape=jax.ShapeDtypeStruct((Rp, lanes), jnp.float32),
        compiler_params=pltpu.CompilerParams(dimension_semantics=("arbitrary",)),
    )(words_pk, const)

    vals = vals_pk.reshape(B, N - 1, C, C)       # contiguous / free reshape in the wrapper
    return vals, params["rec"]


def lincrf_reference(words, w_lin, b_lin, w_trans, w_rec):
    """Pure-JAX reference mirroring the PyTorch forward exactly."""
    V = w_lin.shape[1]
    onehot = jax.nn.one_hot(words, V, dtype=jnp.float32)                 # identity embedding
    final = onehot @ w_lin.T + b_lin                                     # (B, N, C)
    vals = final[:, 1:, :, None] + w_trans[None, None, :, :]             # (B, N-1, C, C)
    vals = vals.at[:, 0].add(final[:, 0][:, None, :])
    rec = jax.nn.log_softmax(w_rec.T, axis=0)                            # (V, C)
    return vals, rec


if __name__ == "__main__":
    # Small shapes consistent with the module: batch=2, seq N=8, voc_size=32, C=8 tags.
    B, N, V, C = 2, 8, 32, 8

    key = jax.random.PRNGKey(0)
    k_words, k_wl, k_bl, k_tr, k_re = jax.random.split(key, 5)
    words = jax.random.randint(k_words, (B, N), 0, V, dtype=jnp.int32)
    w_lin = (0.1 * jax.random.normal(k_wl, (C, V))).astype(jnp.float32)    # linear.weight
    b_lin = (0.1 * jax.random.normal(k_bl, (C,))).astype(jnp.float32)      # linear.bias
    w_trans = (0.1 * jax.random.normal(k_tr, (C, C))).astype(jnp.float32)  # transition.weight
    w_rec = (0.1 * jax.random.normal(k_re, (C, V))).astype(jnp.float32)    # rec_emission.weight

    params, cfg = prepare_params(w_lin, b_lin, w_trans, w_rec, B, N)
    fwd = jax.jit(functools.partial(lincrf_forward, cfg=cfg))
    vals, rec_probs = fwd(words, params)
    jax.block_until_ready((vals, rec_probs))

    vals_ref, rec_ref = lincrf_reference(words, w_lin, b_lin, w_trans, w_rec)
    assert vals.shape == (B, N - 1, C, C) and rec_probs.shape == (V, C)
    assert jnp.allclose(vals, vals_ref, rtol=1e-5, atol=1e-5)
    assert jnp.allclose(rec_probs, rec_ref, rtol=1e-5, atol=1e-5)

    print("KERNEL_OK")
</pallas_src>

<mosaic_0001>
module attributes {stable_mosaic.version = 11 : i64} {
  func.func @_lincrf_kernel(%arg0: i32, %arg1: memref<7x4xi32, #tpu.memory_space<vmem>>, %arg2: memref<135x128xf32, #tpu.memory_space<vmem>>, %arg3: memref<7x128xf32, #tpu.memory_space<vmem>>) attributes {dimension_semantics = [#tpu.dimension_semantics<arbitrary>], iteration_bounds = array<i64: 1>, scalar_prefetch = 0 : i64, scratch_operands = 0 : i64, tpu.core_type = #tpu.core_type<tc>, window_params = [{pipeline_mode = #tpu.pipeline_mode<synchronous>, transform_indices = @transform_0, window_bounds = array<i64: 7, 4>}, {pipeline_mode = #tpu.pipeline_mode<synchronous>, transform_indices = @transform_1, window_bounds = array<i64: 135, 128>}, {pipeline_mode = #tpu.pipeline_mode<synchronous>, transform_indices = @transform_2, window_bounds = array<i64: 7, 128>}]} {
    %c0 = arith.constant 0 : index
    %c0_0 = arith.constant 0 : index
    %0 = vector.load %arg1[%c0, %c0_0] : memref<7x4xi32, #tpu.memory_space<vmem>>, vector<7x4xi32>
    %1 = tpu.iota {dimensions = array<i32: 1>} : vector<7x128xi32>
    %2 = vector.extract_strided_slice %0 {offsets = [0, 3], sizes = [7, 1], strides = [1, 1]} : vector<7x4xi32> to vector<7x1xi32>
    %c96_i32 = arith.constant 96 : i32
    %3 = vector.broadcast %c96_i32 : i32 to vector<7x1xi32>
    %4 = arith.addi %2, %3 : vector<7x1xi32>
    %c96_i32_1 = arith.constant 96 : i32
    %5 = vector.broadcast %c96_i32_1 : i32 to vector<7x128xi32>
    %6 = arith.cmpi slt, %1, %5 : vector<7x128xi32>
    %7 = vector.extract_strided_slice %0 {offsets = [0, 2], sizes = [7, 1], strides = [1, 1]} : vector<7x4xi32> to vector<7x1xi32>
    %c64_i32 = arith.constant 64 : i32
    %8 = vector.broadcast %c64_i32 : i32 to vector<7x1xi32>
    %9 = arith.addi %7, %8 : vector<7x1xi32>
    %10 = vector.shape_cast %9 : vector<7x1xi32> to vector<7x1xi32>
    %11 = vector.broadcast %10 : vector<7x1xi32> to vector<7x128xi32>
    %12 = vector.shape_cast %4 : vector<7x1xi32> to vector<7x1xi32>
    %13 = vector.broadcast %12 : vector<7x1xi32> to vector<7x128xi32>
    %14 = arith.select %6, %11, %13 : vector<7x128xi1>, vector<7x128xi32>
    %c64_i32_2 = arith.constant 64 : i32
    %15 = vector.broadcast %c64_i32_2 : i32 to vector<7x128xi32>
    %16 = arith.cmpi slt, %1, %15 : vector<7x128xi32>
    %17 = vector.extract_strided_slice %0 {offsets = [0, 1], sizes = [7, 1], strides = [1, 1]} : vector<7x4xi32> to vector<7x1xi32>
    %c32_i32 = arith.constant 32 : i32
    %18 = vector.broadcast %c32_i32 : i32 to vector<7x1xi32>
    %19 = arith.addi %17, %18 : vector<7x1xi32>
    %20 = vector.shape_cast %19 : vector<7x1xi32> to vector<7x1xi32>
    %21 = vector.broadcast %20 : vector<7x1xi32> to vector<7x128xi32>
    %22 = arith.select %16, %21, %14 : vector<7x128xi1>, vector<7x128xi32>
    %c32_i32_3 = arith.constant 32 : i32
    %23 = vector.broadcast %c32_i32_3 : i32 to vector<7x128xi32>
    %24 = arith.cmpi slt, %1, %23 : vector<7x128xi32>
    %25 = vector.extract_strided_slice %0 {offsets = [0, 0], sizes = [7, 1], strides = [1, 1]} : vector<7x4xi32> to vector<7x1xi32>
    %c0_i32 = arith.constant 0 : i32
    %26 = vector.broadcast %c0_i32 : i32 to vector<7x1xi32>
    %27 = arith.addi %25, %26 : vector<7x1xi32>
    %28 = vector.shape_cast %27 : vector<7x1xi32> to vector<7x1xi32>
    %29 = vector.broadcast %28 : vector<7x1xi32> to vector<7x128xi32>
    %30 = arith.select %24, %29, %22 : vector<7x128xi1>, vector<7x128xi32>
    %31 = arith.cmpi eq, %30, %1 : vector<7x128xi32>
    %32 = arith.extui %31 : vector<7x128xi1> to vector<7x128xi32>
    %33 = arith.sitofp %32 : vector<7x128xi32> to vector<7x128xf32>
    %c0_4 = arith.constant 0 : index
    %c0_5 = arith.constant 0 : index
    %34 = vector.load %arg2[%c0_4, %c0_5] : memref<135x128xf32, #tpu.memory_space<vmem>>, vector<128x128xf32>
    %c128 = arith.constant 128 : index
    %c0_6 = arith.constant 0 : index
    %35 = vector.load %arg2[%c128, %c0_6] : memref<135x128xf32, #tpu.memory_space<vmem>>, vector<7x128xf32>
    %cst = arith.constant dense<0.000000e+00> : vector<7x128xf32>
    %36 = tpu.matmul %33, %34, %cst {dimension_numbers = #tpu.dot_dimension_numbers<[1], [0], [0], [1], [0, 0, 1, 1], [], []>} : vector<7x128xf32>, vector<128x128xf32>, vector<7x128xf32> -> vector<7x128xf32>
    %37 = arith.addf %36, %35 : vector<7x128xf32>
    %c0_7 = arith.constant 0 : index
    %c0_8 = arith.constant 0 : index
    %38 = vector.load %arg3[%c0_7, %c0_8] : memref<7x128xf32, #tpu.memory_space<vmem>>, vector<7x128xf32>
    tpu.vector_store %arg3[%c0_7, %c0_8], %37 {strides = array<i32>} : memref<7x128xf32, #tpu.memory_space<vmem>>, vector<7x128xf32>,
    return
  }
  func.func @transform_0(%arg0: i32) -> (i32, i32) {
    %c0_i32 = arith.constant 0 : i32
    %c0_i32_0 = arith.constant 0 : i32
    %c0_i32_1 = arith.constant 0 : i32
    return %c0_i32, %c0_i32_0 : i32, i32
  }
  func.func @transform_1(%arg0: i32) -> (i32, i32) {
    %c0_i32 = arith.constant 0 : i32
    %c0_i32_0 = arith.constant 0 : i32
    %c0_i32_1 = arith.constant 0 : i32
    return %c0_i32, %c0_i32_0 : i32, i32
  }
  func.func @transform_2(%arg0: i32) -> (i32, i32) {
    %c0_i32 = arith.constant 0 : i32
    %c0_i32_0 = arith.constant 0 : i32
    %c0_i32_1 = arith.constant 0 : i32
    return %c0_i32, %c0_i32_0 : i32, i32
  }
}

</mosaic_0001>

<bundles_post_ra>
// kernel: lincrf_forward.1
= control target key start
LH: loop header
LB: loop body
LE: loop exit
PB: predicated region body
PF: predicated region fallthrough
CT: control target
= control target key end

     0   :  { %7 = vsyncpa [#allocation3], 0  ;;  %s138_s12 = smov [#allocation2]   ;;  %s139_s14 = smov 128   ;;  %s170_s0 = inlined_call_operand.vmem [shape: s32[7,4], index: 0, kind: input, shape index: {}]   ;;  %s171_s1 = inlined_call_operand.hbm [shape: f32[135,128], index: 1, kind: input, shape index: {}]   ;;  %s172_s2 = inlined_call_operand.vmem [shape: f32[7,128], index: 2, kind: output, shape index: {}]  }
   0x1   :  { %s14_s11 = sshll.u32 %s171_s1, 4  ;;  %s16_s13 = sshll.u32 %s138_s12, 4  ;;  %s15_s11 = int_to_ptr.hbm [resolvable:$true] %s14_s11  ;;  %s17_s13 = int_to_ptr.vmem [resolvable:$true] %s16_s13 }
   0x2   :  { %s140_s15 = smov 8  }
   0x3   :  { %22 = dma.hbm_to_vmem [thread:$0]  %s15_s11, 2176, %s17_s13, [#allocation3], %s139_s14, %s139_s14, %s140_s15  }
   0x4   :  { %136 = dma.done.wait [#allocation3], 2176  }
   0x5   :  { %137 = vsyncadd [#allocation3], 4294965120  ;;  %v141_v0 = vmov 2   ;;  %v142_v1 = vmov 1   ;;  %v27_v2 = vld [vmem:[%s170_s0] sm:$0x7f]  ;;  %v28_v24 = vlaneseq }
   0x6   :  { %107 = vset.pattern.permute.xlu0 %v141_v0  ;;  %109 = vset.pattern.permute.xlu1 %v142_v1  ;;  %v69_v3 = vld [vmem:[#allocation2 + $0x78] sm:$0xff]  ;;  %v32_v4 = vadd.s32 64, %v27_v2  ;;  %v41_v5 = vadd.s32 32, %v27_v2  ;;  %v68_v6 = vld [vmem:[#allocation2 + $0x70] sm:$0xff]  ;;  %v67_v7 = vld [vmem:[#allocation2 + $0x68] sm:$0xff]  ;;  %v30_v10 = vadd.s32 96, %v27_v2 }
   0x7   :  { %71 = vmatpush.msra.mxu0 %v69_v3  ;;  %v66_v8 = vld [vmem:[#allocation2 + $0x60] sm:$0xff]  ;;  %v65_v9 = vld [vmem:[#allocation2 + $0x58] sm:$0xff]  ;;  %v64_v11 = vld [vmem:[#allocation2 + $0x50] sm:$0xff]  ;;  %v143_v12 = vmov 3   ;;  %v144_v13 = vmov 0   ;;  %v29_v27 = vand.u32 127, %v28_v24 }
   0x8   :  { %34 = vperm.xlu0 %107, %v32_v4   ;;  %43 = vperm.xlu1 %109, %v41_v5   ;;  %v63_v14 = vld [vmem:[#allocation2 + $0x48] sm:$0xff]  ;;  %v62_v15 = vld [vmem:[#allocation2 + $0x40] sm:$0xff]  ;;  %v61_v16 = vld [vmem:[#allocation2 + $0x38] sm:$0xff]  ;;  %v145_v33 = vmov 1.0  }
   0x9   :  { %72 = vmatpush.msra.mxu0 %v68_v6  ;;  %v60_v17 = vld [vmem:[#allocation2 + $0x30] sm:$0xff]  ;;  %v59_v18 = vld [vmem:[#allocation2 + $0x28] sm:$0xff]  ;;  %v58_v19 = vld [vmem:[#allocation2 + $0x20] sm:$0xff]  ;;  %vm31_vm0 = vcmp.lt.s32.totalorder %v29_v27, 96  ;;  %vm40_vm1 = vcmp.lt.s32.totalorder %v29_v27, 64  ;;  %vm46_vm2 = vcmp.lt.s32.totalorder %v29_v27, 32 }
   0xa   :  { %v57_v20 = vld [vmem:[#allocation2 + $0x18] sm:$0xff]  ;;  %v56_v21 = vld [vmem:[#allocation2 + $0x10] sm:$0xff]  ;;  %v55_v22 = vld [vmem:[#allocation2 + $0x8] sm:$0xff] }
   0xb   :  { %73 = vmatpush.msra.mxu0 %v67_v7  ;;  %v54_v23 = vld [vmem:[#allocation2] sm:$0xff] }
   0xc   :  { %v70_v34 = vld [vmem:[#allocation2 + $0x80] sm:$0x7f] }
   0xd   :  { %74 = vmatpush.msra.mxu0 %v66_v8 }
   0xf   :  { %75 = vmatpush.msra.mxu0 %v65_v9 }
  0x10   :  { %108 = vset.pattern.permute.xlu0 %v143_v12  ;;  %110 = vset.pattern.permute.xlu1 %v144_v13 }
  0x11   :  { %37 = vperm.xlu0 %108, %v30_v10   ;;  %48 = vperm.xlu1 %110, %v27_v2  }
  0x12   :  { %76 = vmatpush.msra.mxu0 %v64_v11 }
  0x14   :  { %77 = vmatpush.msra.mxu0 %v63_v14 }
  0x16   :  { %78 = vmatpush.msra.mxu0 %v62_v15 }
  0x18   :  { %79 = vmatpush.msra.mxu0 %v61_v16 }
  0x19   :  { %111 = vset.pattern.permute.xlu0 %v144_v13 }
  0x1a   :  { %80 = vmatpush.msra.mxu0 %v60_v17 }
  0x1c   :  { %81 = vmatpush.msra.mxu0 %v59_v18 }
  0x1e   :  { %82 = vmatpush.msra.mxu0 %v58_v19 }
  0x20   :  { %83 = vmatpush.msra.mxu0 %v57_v20 }
  0x22   :  { %84 = vmatpush.msra.mxu0 %v56_v21 }
  0x24   :  { %85 = vmatpush.msra.mxu0 %v55_v22 }
  0x26   :  { %86 = vmatpush.msra.mxu0 %v54_v23 }
  0x7a   :  { %v35_v25 = vpop.permute.xlu0 %34  ;;  %v44_v26 = vpop.permute.xlu1 %43 }
  0x83   :  { %v38_v28 = vpop.permute.xlu0 %37  ;;  %v49_v29 = vpop.permute.xlu1 %48 }
  0x84   :  { %v39_v30 = vsel %vm31_vm0, %v35_v25, %v38_v28 }
  0x85   :  { %v45_v31 = vsel %vm40_vm1, %v44_v26, %v39_v30 }
  0x86   :  { %v50_v32 = vsel %vm46_vm2, %v49_v29, %v45_v31 }
  0x87   :  { %vm51_vm3 = vcmp.eq.s32.totalorder %v50_v32, %v29_v27 }
  0x88   :  { %98 = vmatmul.msk.f32.vlgmr.msra.gmra.mxu0 %vm51_vm3, %v145_v33 }
 0x105   :  { %v88_v35 = vpop.f32.mrf.mxu0 }
 0x106   :  { %v89_v36 = vadd.f32 %v88_v35, %v70_v34 }
 0x108   :  { %91 = vst [vmem:[%s172_s2] sm:$0x7f] %v89_v36 }
 0x109   :  { %96 = vsyncpa [#allocation3], 1 }

</bundles_post_ra>
